<compile_context>
chip_gen: v7x
topology: tpu7x:2x2x1
jax: 0.10.0
libtpu: 0.0.40
codegen_flags: <defaults>
</compile_context>

<pallas_src>
import jax
import jax.numpy as jnp
from jax import lax
from jax.experimental import pallas as pl
from jax.experimental.pallas import tpu as pltpu

IN_F = 3    # ojos in_features
HID_F = 5   # ojos out_features / cerebro in_features
OUT_F = 1   # cerebro out_features

LANES = 128   # batch elements per lane group
CHUNK = 64    # sublanes per inner-loop chunk (64 * 128 = 8192 rows)


def triple_ojo_kernel(xt_ref, w1_ref, b1_ref, w2_ref, b2_ref, o_ref):
    """One grid step.

    xt_ref: (3, S, 128) f32 VMEM  -- batch on (sublane, lane)
    w1_ref: (3, 5) f32 SMEM       -- ojos weight, stored (in, out)
    b1_ref: (1, 5) f32 SMEM
    w2_ref: (5, 1) f32 SMEM       -- cerebro weight, stored (in, out)
    b2_ref: (1, 1) f32 SMEM
    o_ref : (1, S, 128) f32 VMEM
    """
    # Hoist all 26 parameter scalar reads out of the chunk loop (read once per step).
    w1 = [[w1_ref[k, j] for j in range(HID_F)] for k in range(IN_F)]
    b1 = [b1_ref[0, j] for j in range(HID_F)]
    w2 = [w2_ref[j, 0] for j in range(HID_F)]
    b2 = b2_ref[0, 0]

    s_total = o_ref.shape[1]

    def mlp_chunk(start, rows):
        # Three (rows, 128) input slabs; all compute is lane/sublane-parallel VPU work.
        xk = [xt_ref[k, pl.ds(start, rows), :] for k in range(IN_F)]
        acc = None
        for j in range(HID_F):
            h = xk[0] * w1[0][j]
            for k in range(1, IN_F):
                h = h + xk[k] * w1[k][j]
            h = jnp.maximum(h + b1[j], 0.0)            # relu(ojos(x))_j
            contrib = h * w2[j]
            acc = contrib if acc is None else acc + contrib
        y = jnp.maximum(acc + b2, 0.0)                 # relu(cerebro(...))
        o_ref[0, pl.ds(start, rows), :] = y.astype(o_ref.dtype)

    n_full = s_total // CHUNK
    rem = s_total - n_full * CHUNK

    if n_full > 0:
        def body(c, carry):
            mlp_chunk(pl.multiple_of(c * CHUNK, CHUNK), CHUNK)
            return carry
        lax.fori_loop(0, n_full, body, 0, unroll=True)
    if rem > 0:
        mlp_chunk(n_full * CHUNK, rem)


def _pick_block_cols(n_cols, block_cols):
    block_cols = max(8, (block_cols // 8) * 8)
    if n_cols > block_cols:
        return block_cols
    if n_cols >= 16:
        # Keep >= 2 grid steps so ("parallel",) can use both TensorCores on v7x.
        s = -(-n_cols // 2)
        s = ((s + 7) // 8) * 8
        return min(s, n_cols)
    return n_cols


def triple_ojo(x, w1, b1, w2, b2, *, block_cols=1024):
    """x: (B, 3) float32 -> (B, 1) float32.  block_cols = sublane groups per grid step."""
    B = x.shape[0]
    n_cols = pl.cdiv(B, LANES)
    B_pad = n_cols * LANES

    # Pad only to the next multiple of 128 (<=127 rows), then lay the batch on
    # (sublane, lane): (B_pad, 3) -> (3, B_pad) -> view (3, n_cols, 128).
    xp = x if B_pad == B else jnp.pad(x, ((0, B_pad - B), (0, 0)))
    xt = xp.T.reshape(IN_F, n_cols, LANES)   # one transpose copy; the reshape is a view

    S = _pick_block_cols(n_cols, block_cols)
    grid = (pl.cdiv(n_cols, S),)             # ragged last block is masked by Pallas

    block_vmem = 2 * (IN_F + OUT_F) * S * LANES * 4   # double-buffered in+out blocks
    vmem_limit = min(48 * 1024 * 1024, block_vmem + (8 << 20))

    out_t = pl.pallas_call(
        triple_ojo_kernel,
        out_shape=jax.ShapeDtypeStruct((OUT_F, n_cols, LANES), jnp.float32),
        grid_spec=pltpu.PrefetchScalarGridSpec(
            num_scalar_prefetch=0,
            grid=grid,
            in_specs=[
                pl.BlockSpec((IN_F, S, LANES), lambda i: (0, i, 0)),  # x tile (pipelined)
                pl.BlockSpec(memory_space=pltpu.SMEM),                # w1, resident
                pl.BlockSpec(memory_space=pltpu.SMEM),                # b1, resident
                pl.BlockSpec(memory_space=pltpu.SMEM),                # w2, resident
                pl.BlockSpec(memory_space=pltpu.SMEM),                # b2, resident
            ],
            out_specs=pl.BlockSpec((OUT_F, S, LANES), lambda i: (0, i, 0)),
        ),
        compiler_params=pltpu.CompilerParams(
            dimension_semantics=("parallel",),       # both TCs on v7x; no-op on v5e/v6e
            vmem_limit_bytes=vmem_limit,
        ),
        cost_estimate=pl.CostEstimate(
            flops=(2 * IN_F * HID_F + 2 * HID_F + HID_F + OUT_F) * B_pad,
            transcendentals=0,
            bytes_accessed=(IN_F + OUT_F) * 4 * B_pad,
        ),
    )(xt, w1, b1, w2, b2)

    return out_t.reshape(B_pad, OUT_F)[:B]


def init_params(key):
    """Deterministic init mimicking nn.Linear's uniform(-1/sqrt(fan_in), +1/sqrt(fan_in))."""
    k1, k2, k3, k4 = jax.random.split(key, 4)
    bound1 = 1.0 / jnp.sqrt(3.0)
    bound2 = 1.0 / jnp.sqrt(5.0)
    # stored (in_features, out_features) so forward is x @ W + b
    w1 = jax.random.uniform(k1, (IN_F, HID_F), jnp.float32, -bound1, bound1)
    b1 = jax.random.uniform(k2, (1, HID_F), jnp.float32, -bound1, bound1)
    w2 = jax.random.uniform(k3, (HID_F, OUT_F), jnp.float32, -bound2, bound2)
    b2 = jax.random.uniform(k4, (1, OUT_F), jnp.float32, -bound2, bound2)
    return w1, b1, w2, b2


def reference(x, w1, b1, w2, b2):
    h = jnp.maximum(x @ w1 + b1, 0.0)
    return jnp.maximum(h @ w2 + b2, 0.0)


if __name__ == "__main__":
    key = jax.random.PRNGKey(0)
    kx1, kx2, kx3, kp = jax.random.split(key, 4)
    w1, b1, w2, b2 = init_params(kp)

    # small batch, single block (feature dim fixed at 3 by the module)
    x_small = jax.random.normal(kx1, (8, IN_F), jnp.float32)
    out_small = triple_ojo(x_small, w1, b1, w2, b2)
    jax.block_until_ready(out_small)
    assert out_small.shape == (8, OUT_F)
    assert jnp.allclose(out_small, reference(x_small, w1, b1, w2, b2),
                        atol=1e-5, rtol=1e-5), "mismatch (small)"

    # multi-step grid with a ragged last block (pipelining + write masking)
    x_mid = jax.random.normal(kx2, (2500, IN_F), jnp.float32)
    out_mid = triple_ojo(x_mid, w1, b1, w2, b2, block_cols=8)   # grid=(3,)
    jax.block_until_ready(out_mid)
    assert out_mid.shape == (2500, OUT_F)
    assert jnp.allclose(out_mid, reference(x_mid, w1, b1, w2, b2),
                        atol=1e-5, rtol=1e-5), "mismatch (ragged grid)"

    # larger batch: 2-step parallel grid plus the in-kernel 64-sublane chunk loop
    x_big = jax.random.normal(kx3, (20000, IN_F), jnp.float32)
    out_big = triple_ojo(x_big, w1, b1, w2, b2)                 # S=80, grid=(2,)
    jax.block_until_ready(out_big)
    assert out_big.shape == (20000, OUT_F)
    assert jnp.allclose(out_big, reference(x_big, w1, b1, w2, b2),
                        atol=1e-5, rtol=1e-5), "mismatch (big)"

    print("KERNEL_OK")
</pallas_src>

<mosaic_0001>
module attributes {stable_mosaic.version = 11 : i64} {
  func.func @triple_ojo_kernel(%arg0: i32, %arg1: memref<3x1x128xf32, #tpu.memory_space<vmem>>, %arg2: memref<3x5xf32, #tpu.memory_space<smem>>, %arg3: memref<1x5xf32, #tpu.memory_space<smem>>, %arg4: memref<5x1xf32, #tpu.memory_space<smem>>, %arg5: memref<1x1xf32, #tpu.memory_space<smem>>, %arg6: memref<1x1x128xf32, #tpu.memory_space<vmem>>) attributes {dimension_semantics = [#tpu.dimension_semantics<parallel>], iteration_bounds = array<i64: 1>, scalar_prefetch = 0 : i64, scratch_operands = 0 : i64, tpu.core_type = #tpu.core_type<tc>, window_params = [{transform_indices = @transform_0, window_bounds = array<i64: 3, 1, 128>}, {transform_indices = @transform_1, window_bounds = array<i64: 3, 5>}, {transform_indices = @transform_2, window_bounds = array<i64: 1, 5>}, {transform_indices = @transform_3, window_bounds = array<i64: 5, 1>}, {transform_indices = @transform_4, window_bounds = array<i64: 1, 1>}, {transform_indices = @transform_5, window_bounds = array<i64: 1, 1, 128>}]} {
    %c0 = arith.constant 0 : index
    %c0_0 = arith.constant 0 : index
    %0 = memref.load %arg2[%c0, %c0_0] : memref<3x5xf32, #tpu.memory_space<smem>>
    %c0_1 = arith.constant 0 : index
    %c1 = arith.constant 1 : index
    %1 = memref.load %arg2[%c0_1, %c1] : memref<3x5xf32, #tpu.memory_space<smem>>
    %c0_2 = arith.constant 0 : index
    %c2 = arith.constant 2 : index
    %2 = memref.load %arg2[%c0_2, %c2] : memref<3x5xf32, #tpu.memory_space<smem>>
    %c0_3 = arith.constant 0 : index
    %c3 = arith.constant 3 : index
    %3 = memref.load %arg2[%c0_3, %c3] : memref<3x5xf32, #tpu.memory_space<smem>>
    %c0_4 = arith.constant 0 : index
    %c4 = arith.constant 4 : index
    %4 = memref.load %arg2[%c0_4, %c4] : memref<3x5xf32, #tpu.memory_space<smem>>
    %c1_5 = arith.constant 1 : index
    %c0_6 = arith.constant 0 : index
    %5 = memref.load %arg2[%c1_5, %c0_6] : memref<3x5xf32, #tpu.memory_space<smem>>
    %c1_7 = arith.constant 1 : index
    %c1_8 = arith.constant 1 : index
    %6 = memref.load %arg2[%c1_7, %c1_8] : memref<3x5xf32, #tpu.memory_space<smem>>
    %c1_9 = arith.constant 1 : index
    %c2_10 = arith.constant 2 : index
    %7 = memref.load %arg2[%c1_9, %c2_10] : memref<3x5xf32, #tpu.memory_space<smem>>
    %c1_11 = arith.constant 1 : index
    %c3_12 = arith.constant 3 : index
    %8 = memref.load %arg2[%c1_11, %c3_12] : memref<3x5xf32, #tpu.memory_space<smem>>
    %c1_13 = arith.constant 1 : index
    %c4_14 = arith.constant 4 : index
    %9 = memref.load %arg2[%c1_13, %c4_14] : memref<3x5xf32, #tpu.memory_space<smem>>
    %c2_15 = arith.constant 2 : index
    %c0_16 = arith.constant 0 : index
    %10 = memref.load %arg2[%c2_15, %c0_16] : memref<3x5xf32, #tpu.memory_space<smem>>
    %c2_17 = arith.constant 2 : index
    %c1_18 = arith.constant 1 : index
    %11 = memref.load %arg2[%c2_17, %c1_18] : memref<3x5xf32, #tpu.memory_space<smem>>
    %c2_19 = arith.constant 2 : index
    %c2_20 = arith.constant 2 : index
    %12 = memref.load %arg2[%c2_19, %c2_20] : memref<3x5xf32, #tpu.memory_space<smem>>
    %c2_21 = arith.constant 2 : index
    %c3_22 = arith.constant 3 : index
    %13 = memref.load %arg2[%c2_21, %c3_22] : memref<3x5xf32, #tpu.memory_space<smem>>
    %c2_23 = arith.constant 2 : index
    %c4_24 = arith.constant 4 : index
    %14 = memref.load %arg2[%c2_23, %c4_24] : memref<3x5xf32, #tpu.memory_space<smem>>
    %c0_25 = arith.constant 0 : index
    %c0_26 = arith.constant 0 : index
    %15 = memref.load %arg3[%c0_25, %c0_26] : memref<1x5xf32, #tpu.memory_space<smem>>
    %c0_27 = arith.constant 0 : index
    %c1_28 = arith.constant 1 : index
    %16 = memref.load %arg3[%c0_27, %c1_28] : memref<1x5xf32, #tpu.memory_space<smem>>
    %c0_29 = arith.constant 0 : index
    %c2_30 = arith.constant 2 : index
    %17 = memref.load %arg3[%c0_29, %c2_30] : memref<1x5xf32, #tpu.memory_space<smem>>
    %c0_31 = arith.constant 0 : index
    %c3_32 = arith.constant 3 : index
    %18 = memref.load %arg3[%c0_31, %c3_32] : memref<1x5xf32, #tpu.memory_space<smem>>
    %c0_33 = arith.constant 0 : index
    %c4_34 = arith.constant 4 : index
    %19 = memref.load %arg3[%c0_33, %c4_34] : memref<1x5xf32, #tpu.memory_space<smem>>
    %c0_35 = arith.constant 0 : index
    %c0_36 = arith.constant 0 : index
    %20 = memref.load %arg4[%c0_35, %c0_36] : memref<5x1xf32, #tpu.memory_space<smem>>
    %c1_37 = arith.constant 1 : index
    %c0_38 = arith.constant 0 : index
    %21 = memref.load %arg4[%c1_37, %c0_38] : memref<5x1xf32, #tpu.memory_space<smem>>
    %c2_39 = arith.constant 2 : index
    %c0_40 = arith.constant 0 : index
    %22 = memref.load %arg4[%c2_39, %c0_40] : memref<5x1xf32, #tpu.memory_space<smem>>
    %c3_41 = arith.constant 3 : index
    %c0_42 = arith.constant 0 : index
    %23 = memref.load %arg4[%c3_41, %c0_42] : memref<5x1xf32, #tpu.memory_space<smem>>
    %c4_43 = arith.constant 4 : index
    %c0_44 = arith.constant 0 : index
    %24 = memref.load %arg4[%c4_43, %c0_44] : memref<5x1xf32, #tpu.memory_space<smem>>
    %c0_45 = arith.constant 0 : index
    %c0_46 = arith.constant 0 : index
    %25 = memref.load %arg5[%c0_45, %c0_46] : memref<1x1xf32, #tpu.memory_space<smem>>
    %c0_47 = arith.constant 0 : index
    %c0_48 = arith.constant 0 : index
    %c0_49 = arith.constant 0 : index
    %26 = vector.load %arg1[%c0_47, %c0_48, %c0_49] : memref<3x1x128xf32, #tpu.memory_space<vmem>>, vector<1x1x128xf32>
    %27 = vector.shape_cast %26 : vector<1x1x128xf32> to vector<1x128xf32>
    %c1_50 = arith.constant 1 : index
    %c0_51 = arith.constant 0 : index
    %c0_52 = arith.constant 0 : index
    %28 = vector.load %arg1[%c1_50, %c0_51, %c0_52] : memref<3x1x128xf32, #tpu.memory_space<vmem>>, vector<1x1x128xf32>
    %29 = vector.shape_cast %28 : vector<1x1x128xf32> to vector<1x128xf32>
    %c2_53 = arith.constant 2 : index
    %c0_54 = arith.constant 0 : index
    %c0_55 = arith.constant 0 : index
    %30 = vector.load %arg1[%c2_53, %c0_54, %c0_55] : memref<3x1x128xf32, #tpu.memory_space<vmem>>, vector<1x1x128xf32>
    %31 = vector.shape_cast %30 : vector<1x1x128xf32> to vector<1x128xf32>
    %32 = vector.broadcast %0 : f32 to vector<1x128xf32>
    %33 = arith.mulf %27, %32 : vector<1x128xf32>
    %34 = vector.broadcast %5 : f32 to vector<1x128xf32>
    %35 = arith.mulf %29, %34 : vector<1x128xf32>
    %36 = arith.addf %33, %35 : vector<1x128xf32>
    %37 = vector.broadcast %10 : f32 to vector<1x128xf32>
    %38 = arith.mulf %31, %37 : vector<1x128xf32>
    %39 = arith.addf %36, %38 : vector<1x128xf32>
    %40 = vector.broadcast %15 : f32 to vector<1x128xf32>
    %41 = arith.addf %39, %40 : vector<1x128xf32>
    %cst = arith.constant 0.000000e+00 : f32
    %42 = vector.broadcast %cst : f32 to vector<1x128xf32>
    %43 = arith.maximumf %41, %42 : vector<1x128xf32>
    %44 = vector.broadcast %20 : f32 to vector<1x128xf32>
    %45 = arith.mulf %43, %44 : vector<1x128xf32>
    %46 = vector.broadcast %1 : f32 to vector<1x128xf32>
    %47 = arith.mulf %27, %46 : vector<1x128xf32>
    %48 = vector.broadcast %6 : f32 to vector<1x128xf32>
    %49 = arith.mulf %29, %48 : vector<1x128xf32>
    %50 = arith.addf %47, %49 : vector<1x128xf32>
    %51 = vector.broadcast %11 : f32 to vector<1x128xf32>
    %52 = arith.mulf %31, %51 : vector<1x128xf32>
    %53 = arith.addf %50, %52 : vector<1x128xf32>
    %54 = vector.broadcast %16 : f32 to vector<1x128xf32>
    %55 = arith.addf %53, %54 : vector<1x128xf32>
    %cst_56 = arith.constant 0.000000e+00 : f32
    %56 = vector.broadcast %cst_56 : f32 to vector<1x128xf32>
    %57 = arith.maximumf %55, %56 : vector<1x128xf32>
    %58 = vector.broadcast %21 : f32 to vector<1x128xf32>
    %59 = arith.mulf %57, %58 : vector<1x128xf32>
    %60 = arith.addf %45, %59 : vector<1x128xf32>
    %61 = vector.broadcast %2 : f32 to vector<1x128xf32>
    %62 = arith.mulf %27, %61 : vector<1x128xf32>
    %63 = vector.broadcast %7 : f32 to vector<1x128xf32>
    %64 = arith.mulf %29, %63 : vector<1x128xf32>
    %65 = arith.addf %62, %64 : vector<1x128xf32>
    %66 = vector.broadcast %12 : f32 to vector<1x128xf32>
    %67 = arith.mulf %31, %66 : vector<1x128xf32>
    %68 = arith.addf %65, %67 : vector<1x128xf32>
    %69 = vector.broadcast %17 : f32 to vector<1x128xf32>
    %70 = arith.addf %68, %69 : vector<1x128xf32>
    %cst_57 = arith.constant 0.000000e+00 : f32
    %71 = vector.broadcast %cst_57 : f32 to vector<1x128xf32>
    %72 = arith.maximumf %70, %71 : vector<1x128xf32>
    %73 = vector.broadcast %22 : f32 to vector<1x128xf32>
    %74 = arith.mulf %72, %73 : vector<1x128xf32>
    %75 = arith.addf %60, %74 : vector<1x128xf32>
    %76 = vector.broadcast %3 : f32 to vector<1x128xf32>
    %77 = arith.mulf %27, %76 : vector<1x128xf32>
    %78 = vector.broadcast %8 : f32 to vector<1x128xf32>
    %79 = arith.mulf %29, %78 : vector<1x128xf32>
    %80 = arith.addf %77, %79 : vector<1x128xf32>
    %81 = vector.broadcast %13 : f32 to vector<1x128xf32>
    %82 = arith.mulf %31, %81 : vector<1x128xf32>
    %83 = arith.addf %80, %82 : vector<1x128xf32>
    %84 = vector.broadcast %18 : f32 to vector<1x128xf32>
    %85 = arith.addf %83, %84 : vector<1x128xf32>
    %cst_58 = arith.constant 0.000000e+00 : f32
    %86 = vector.broadcast %cst_58 : f32 to vector<1x128xf32>
    %87 = arith.maximumf %85, %86 : vector<1x128xf32>
    %88 = vector.broadcast %23 : f32 to vector<1x128xf32>
    %89 = arith.mulf %87, %88 : vector<1x128xf32>
    %90 = arith.addf %75, %89 : vector<1x128xf32>
    %91 = vector.broadcast %4 : f32 to vector<1x128xf32>
    %92 = arith.mulf %27, %91 : vector<1x128xf32>
    %93 = vector.broadcast %9 : f32 to vector<1x128xf32>
    %94 = arith.mulf %29, %93 : vector<1x128xf32>
    %95 = arith.addf %92, %94 : vector<1x128xf32>
    %96 = vector.broadcast %14 : f32 to vector<1x128xf32>
    %97 = arith.mulf %31, %96 : vector<1x128xf32>
    %98 = arith.addf %95, %97 : vector<1x128xf32>
    %99 = vector.broadcast %19 : f32 to vector<1x128xf32>
    %100 = arith.addf %98, %99 : vector<1x128xf32>
    %cst_59 = arith.constant 0.000000e+00 : f32
    %101 = vector.broadcast %cst_59 : f32 to vector<1x128xf32>
    %102 = arith.maximumf %100, %101 : vector<1x128xf32>
    %103 = vector.broadcast %24 : f32 to vector<1x128xf32>
    %104 = arith.mulf %102, %103 : vector<1x128xf32>
    %105 = arith.addf %90, %104 : vector<1x128xf32>
    %106 = vector.broadcast %25 : f32 to vector<1x128xf32>
    %107 = arith.addf %105, %106 : vector<1x128xf32>
    %cst_60 = arith.constant 0.000000e+00 : f32
    %108 = vector.broadcast %cst_60 : f32 to vector<1x128xf32>
    %109 = arith.maximumf %107, %108 : vector<1x128xf32>
    %c0_61 = arith.constant 0 : index
    %c0_62 = arith.constant 0 : index
    %c0_63 = arith.constant 0 : index
    %110 = vector.load %arg6[%c0_61, %c0_62, %c0_63] : memref<1x1x128xf32, #tpu.memory_space<vmem>>, vector<1x1x128xf32>
    %111 = vector.shape_cast %110 : vector<1x1x128xf32> to vector<1x128xf32>
    %112 = vector.shape_cast %109 : vector<1x128xf32> to vector<1x1x128xf32>
    tpu.vector_store %arg6[%c0_61, %c0_62, %c0_63], %112 {strides = array<i32>} : memref<1x1x128xf32, #tpu.memory_space<vmem>>, vector<1x1x128xf32>,
    return
  }
  func.func @transform_0(%arg0: i32) -> (i32, i32, i32) {
    %c0_i32 = arith.constant 0 : i32
    %c0_i32_0 = arith.constant 0 : i32
    %c0_i32_1 = arith.constant 0 : i32
    return %c0_i32, %arg0, %c0_i32_0 : i32, i32, i32
  }
  func.func @transform_1(%arg0: i32) -> (i32, i32) {
    %c0_i32 = arith.constant 0 : i32
    %c0_i32_0 = arith.constant 0 : i32
    %c0_i32_1 = arith.constant 0 : i32
    return %c0_i32, %c0_i32_0 : i32, i32
  }
  func.func @transform_2(%arg0: i32) -> (i32, i32) {
    %c0_i32 = arith.constant 0 : i32
    %c0_i32_0 = arith.constant 0 : i32
    %c0_i32_1 = arith.constant 0 : i32
    return %c0_i32, %c0_i32_0 : i32, i32
  }
  func.func @transform_3(%arg0: i32) -> (i32, i32) {
    %c0_i32 = arith.constant 0 : i32
    %c0_i32_0 = arith.constant 0 : i32
    %c0_i32_1 = arith.constant 0 : i32
    return %c0_i32, %c0_i32_0 : i32, i32
  }
  func.func @transform_4(%arg0: i32) -> (i32, i32) {
    %c0_i32 = arith.constant 0 : i32
    %c0_i32_0 = arith.constant 0 : i32
    %c0_i32_1 = arith.constant 0 : i32
    return %c0_i32, %c0_i32_0 : i32, i32
  }
  func.func @transform_5(%arg0: i32) -> (i32, i32, i32) {
    %c0_i32 = arith.constant 0 : i32
    %c0_i32_0 = arith.constant 0 : i32
    %c0_i32_1 = arith.constant 0 : i32
    return %c0_i32, %arg0, %c0_i32_0 : i32, i32, i32
  }
}

</mosaic_0001>

<bundles_post_ra>
// kernel: tpu_custom_call.1
= control target key start
LH: loop header
LB: loop body
LE: loop exit
PB: predicated region body
PF: predicated region fallthrough
CT: control target
= control target key end

     0   :  { %11 = vsyncpa [#allocation5], 0  ;;  %s397_s0 = inlined_call_operand.vmem [shape: f32[3,1,128], index: 0, kind: input, shape index: {}]   ;;  %s398_s1 = inlined_call_operand.vmem [shape: f32[3,5], index: 1, kind: input, shape index: {}]   ;;  %s399_s2 = inlined_call_operand.vmem [shape: f32[1,5], index: 2, kind: input, shape index: {}]   ;;  %s400_s3 = inlined_call_operand.vmem [shape: f32[5,1], index: 3, kind: input, shape index: {}]   ;;  %s401_s4 = inlined_call_operand.<no memory space> [shape: f32[1,1], index: 4, kind: input, shape index: {}]   ;;  %s402_s5 = inlined_call_operand.hbm [shape: f32[1,1,128], index: 5, kind: output, shape index: {}]  }
   0x1   :  { %12 = vsyncpa [#allocation7], 0  ;;  %s32_s20 = sshll.u32 %s399_s2, 4  ;;  %s33_s20 = int_to_ptr.vmem [resolvable:$true] %s32_s20 }
   0x2   :  { %13 = vsyncpa [#allocation4], 0  ;;  %s22_s23 = sshll.u32 %s398_s1, 4  ;;  %s206_s24 = scalar_lea.vmem %s33_s20, 16  ;;  %s23_s23 = int_to_ptr.vmem [resolvable:$true] %s22_s23 }
   0x3   :  { %p207_p0 = scmp.ne.s32.totalorder %s33_s20, %s206_s24  ;;  %p211_p1 = scmp.lt.s32.totalorder %s33_s20, %s33_s20 }
   0x4   :  { %p212_p2 = scmp.lt.s32.totalorder %s206_s24, %s206_s24 }
   0x6   :  { %p213_p3 = por %p212_p2, %p211_p1 }
   0x8   :  { %p214_p4 = pnand %p213_p3, %p207_p0 }
   0xa   :  { %217 = shalt.err (!%p214_p4)
}
   0xb   :  { %s270_s25 = smov [#allocation6]   ;;  %s218_s26 = scalar_lea.vmem %s23_s23, 64 }
   0xc   :  { %35 = dma.vmem_to_smem %s33_s20, 16, %s270_s25, [#allocation7]  }
   0xd   :  { %p219_p5 = scmp.ne.s32.totalorder %s23_s23, %s218_s26  ;;  %p223_p6 = scmp.lt.s32.totalorder %s23_s23, %s23_s23 }
   0xe   :  { %p224_p7 = scmp.lt.s32.totalorder %s218_s26, %s218_s26 }
  0x10   :  { %p225_p8 = por %p224_p7, %p223_p6 }
  0x12   :  { %p226_p9 = pnand %p225_p8, %p219_p5 }
  0x14   :  { %229 = shalt.err (!%p226_p9)
}
  0x15   :  { %s271_s2 = smov [#allocation3]   ;;  %s42_s28 = sshll.u32 %s400_s3, 4  ;;  %s43_s28 = int_to_ptr.vmem [resolvable:$true] %s42_s28 }
  0x16   :  { %25 = dma.vmem_to_smem %s23_s23, 64, %s271_s2, [#allocation5]  }
  0x17   :  { %s230_s29 = scalar_lea.vmem %s43_s28, 128  ;;  %p235_p11 = scmp.lt.s32.totalorder %s43_s28, %s43_s28 }
  0x18   :  { %p231_p10 = scmp.ne.s32.totalorder %s43_s28, %s230_s29  ;;  %p236_p12 = scmp.lt.s32.totalorder %s230_s29, %s230_s29 }
  0x1a   :  { %p237_p13 = por %p236_p12, %p235_p11 }
  0x1c   :  { %p238_p0 = pnand %p237_p13, %p231_p10 }
  0x1e   :  { %241 = shalt.err (!%p238_p0)
}
  0x1f   :  { %s272_s30 = smov [#allocation8]  }
  0x20   :  { %45 = dma.vmem_to_smem %s43_s28, 128, %s272_s30, [#allocation7]  }
  0x21   :  { %264 = dma.done.wait [#allocation5], 64  }
  0x22   :  { %265 = vsyncadd [#allocation5], 4294967232 }
  0x23   :  { %266 = dma.done.wait [#allocation7], 144  }
  0x24   :  { %267 = vsyncadd [#allocation7], 4294967152 }
  0x25   :  { %57 = sfence }
  0x26   :  { %s58_s6 = sld [smem:[#allocation3]]  ;;  %s178_s7 = sld [smem:[#allocation3 + $0x1]]  ;;  %v84_v0 = vld [vmem:[%s397_s0] sm:$0x1]  ;;  %v200_v1 = vld [vmem:[%s397_s0 + $0x1] sm:$0x1] }
  0x27   :  { %s179_s8 = sld [smem:[#allocation3 + $0x2]]  ;;  %s180_s9 = sld [smem:[#allocation3 + $0x3]]  ;;  %v201_v12 = vld [vmem:[%s397_s0 + $0x2] sm:$0x1] }
  0x28   :  { %s313_s3 = sld [smem:[#allocation3 + $0x4]]  ;;  %s182_s10 = sld [smem:[#allocation3 + $0x80]] }
  0x29   :  { %s315_s11 = sld [smem:[#allocation3 + $0x81]]  ;;  %s317_s12 = sld [smem:[#allocation3 + $0x82]] }
  0x2a   :  { %s319_s13 = sld [smem:[#allocation3 + $0x83]]  ;;  %s321_s14 = sld [smem:[#allocation3 + $0x84]] }
  0x2b   :  { %s326_s17 = sld [smem:[#allocation3 + $0x100]]  ;;  %s328_s18 = sld [smem:[#allocation3 + $0x101]] }
  0x2c   :  { %s330_s19 = sld [smem:[#allocation3 + $0x102]]  ;;  %s332_s20 = sld [smem:[#allocation3 + $0x103]]  ;;  %v89_v2 = vstv %s58_s6  ;;  %v102_v3 = vstv %s178_s7 }
  0x2d   :  { %s337_s23 = sld [smem:[#allocation6]]  ;;  %v90_v4 = vmul.f32 %v89_v2, %v84_v0  ;;  %v103_v5 = vmul.f32 %v102_v3, %v84_v0  ;;  %v116_v6 = vstv %s179_s8  ;;  %v130_v7 = vstv %s180_s9  ;;  %s339_s24 = sld [smem:[#allocation6 + $0x1]] }
  0x2e   :  { %s341_s25 = sld [smem:[#allocation6 + $0x2]]  ;;  %v91_v8 = vstv %s182_s10  ;;  %v117_v9 = vmul.f32 %v116_v6, %v84_v0  ;;  %v131_v10 = vmul.f32 %v130_v7, %v84_v0  ;;  %v144_v11 = vstv %s313_s3  ;;  %s344_s26 = sld [smem:[#allocation3 + $0x104]] }
  0x2f   :  { %s346_s2 = sld [smem:[#allocation6 + $0x3]]  ;;  %v92_v13 = vmul.f32 %v200_v1, %v91_v8  ;;  %v104_v14 = vstv %s315_s11  ;;  %v118_v15 = vstv %s317_s12  ;;  %v145_v16 = vmul.f32 %v144_v11, %v84_v0  ;;  %s353_s28 = sld [smem:[#allocation8]] }
  0x30   :  { %s355_s29 = sld [smem:[#allocation8 + $0x80]]  ;;  %v105_v17 = vmul.f32 %v200_v1, %v104_v14  ;;  %v119_v18 = vmul.f32 %v200_v1, %v118_v15  ;;  %v132_v19 = vstv %s319_s13  ;;  %v146_v20 = vstv %s321_s14  ;;  %s363_s0 = sld [smem:[#allocation6 + $0x4]] }
  0x31   :  { %s359_s30 = sld [smem:[#allocation8 + $0x100]]  ;;  %v93_v21 = vadd.f32 %v92_v13, %v90_v4  ;;  %v94_v22 = vstv %s326_s17  ;;  %v107_v23 = vstv %s328_s18  ;;  %v133_v24 = vmul.f32 %v200_v1, %v132_v19  ;;  %s273_s3 = smov [#allocation9]  }
  0x32   :  { %s365_s6 = sld [smem:[#allocation8 + $0x180]]  ;;  %v95_v25 = vmul.f32 %v201_v12, %v94_v22  ;;  %v106_v26 = vadd.f32 %v105_v17, %v103_v5  ;;  %v108_v27 = vmul.f32 %v201_v12, %v107_v23  ;;  %v120_v28 = vadd.f32 %v119_v18, %v117_v9  ;;  %s168_s10 = sshll.u32 %s273_s3, 4  ;;  %s169_s10 = int_to_ptr.vmem [resolvable:$true] %s168_s10 }
  0x33   :  { %v97_v29 = vstv %s337_s23  ;;  %v121_v30 = vstv %s330_s19  ;;  %v134_v31 = vadd.f32 %v133_v24, %v131_v10  ;;  %v135_v32 = vstv %s332_s20  ;;  %s371_s7 = sld [smem:[#allocation8 + $0x200]]  ;;  %s242_s11 = scalar_lea.vmem %s169_s10, 16 }
  0x34   :  { %v96_v33 = vadd.f32 %v95_v25, %v93_v21  ;;  %v109_v34 = vadd.f32 %v108_v27, %v106_v26  ;;  %v110_v35 = vstv %s339_s24  ;;  %v122_v36 = vmul.f32 %v201_v12, %v121_v30  ;;  %p243_p1 = scmp.ne.s32.totalorder %s169_s10, %s242_s11  ;;  %s246_s12 = scalar_lea.vmem %s169_s10, 32 }
  0x35   :  { %v136_v37 = vmul.f32 %v201_v12, %v135_v32  ;;  %v147_v38 = vmul.f32 %v200_v1, %v146_v20  ;;  %v124_v41 = vstv %s341_s25  ;;  %v138_v42 = vstv %s346_s2  ;;  %p247_p2 = scmp.lt.s32.totalorder %s169_s10, %s169_s10  ;;  %p248_p3 = scmp.lt.s32.totalorder %s246_s12, %s242_s11 }
  0x36   :  { %v98_v39 = vadd.f32 %v97_v29, %v96_v33  ;;  %v111_v40 = vadd.f32 %v110_v35, %v109_v34  ;;  %v100_v43 = vstv %s353_s28  ;;  %v113_v44 = vstv %s355_s29 }
  0x37   :  { %v123_v45 = vadd.f32 %v122_v36, %v120_v28  ;;  %v137_v46 = vadd.f32 %v136_v37, %v134_v31  ;;  %v148_v49 = vadd.f32 %v147_v38, %v145_v16  ;;  %v149_v50 = vstv %s344_s26  ;;  %p249_p4 = por %p248_p3, %p247_p2 }
  0x38   :  { %v99_v47 = vmax.f32 %v98_v39, 0.0  ;;  %v112_v48 = vmax.f32 %v111_v40, 0.0  ;;  %v127_v52 = vstv %s359_s30  ;;  %v150_v54 = vmul.f32 %v201_v12, %v149_v50 }
  0x39   :  { %v125_v51 = vadd.f32 %v124_v41, %v123_v45  ;;  %v139_v53 = vadd.f32 %v138_v42, %v137_v46  ;;  %v141_v57 = vstv %s365_s6  ;;  %v152_v58 = vstv %s363_s0  ;;  %p250_p5 = pnand %p249_p4, %p243_p1 }
  0x3a   :  { %v101_v55 = vmul.f32 %v100_v43, %v99_v47  ;;  %v114_v56 = vmul.f32 %v113_v44, %v112_v48  ;;  %v151_v61 = vadd.f32 %v150_v54, %v148_v49  ;;  %v155_v2 = vstv %s371_s7 }
  0x3b   :  { %v126_v59 = vmax.f32 %v125_v51, 0.0  ;;  %v140_v60 = vmax.f32 %v139_v53, 0.0  ;;  %v158_v7 = vstv %s401_s4 }
  0x3c   :  { %v115_v62 = vadd.f32 %v114_v56, %v101_v55  ;;  %v153_v1 = vadd.f32 %v152_v58, %v151_v61 }
  0x3d   :  { %v128_v63 = vmul.f32 %v127_v52, %v126_v59  ;;  %v142_v0 = vmul.f32 %v141_v57, %v140_v60 }
  0x3e   :  { %v154_v4 = vmax.f32 %v153_v1, 0.0 }
  0x3f   :  { %v129_v3 = vadd.f32 %v128_v63, %v115_v62 }
  0x40   :  { %v156_v6 = vmul.f32 %v155_v2, %v154_v4 }
  0x41   :  { %v143_v5 = vadd.f32 %v142_v0, %v129_v3 }
  0x43   :  { %v157_v8 = vadd.f32 %v156_v6, %v143_v5 }
  0x45   :  { %v159_v9 = vadd.f32 %v158_v7, %v157_v8 }
  0x47   :  { %v160_v10 = vmax.f32 %v159_v9, 0.0 }
  0x49   :  { %161 = vst [vmem:[#allocation9] sm:$0x1] %v160_v10 }
  0x4a   :  { %253 = shalt.err (!%p250_p5)
}
  0x4b   :  { %s254_s15 = scalar_lea.hbm %s402_s5, 16 }
  0x4c   :  { %p255_p6 = scmp.ne.s32.totalorder %s402_s5, %s254_s15  ;;  %p258_p7 = scmp.lt.u32.totalorder %s254_s15, %s402_s5 }
  0x4e   :  { %p260_p8 = pnand %p258_p7, %p255_p6 }
  0x50   :  { %263 = shalt.err (!%p260_p8)
}
  0x51   :  { %171 = dma.vmem_to_hbm [thread:$0]  %s169_s10, 16, %s402_s5, [#allocation4]  }
  0x52   :  { %268 = dma.done.wait [#allocation4], 16  }
  0x53   :  { %269 = vsyncadd [#allocation4], 4294967280 }
  0x54   :  { %175 = vsyncpa [#allocation4], 1 }
  0x55   :  { %176 = vsyncpa [#allocation5], 1 }
  0x56   :  { %177 = vsyncpa [#allocation7], 1 }

</bundles_post_ra>
